<compile_context>
chip_gen: v5e
topology: v5e:2x2
jax: 0.10.0
libtpu: 0.0.40
codegen_flags: <defaults>
</compile_context>

<pallas_src>
import jax
import jax.numpy as jnp
from jax.experimental import pallas as pl
from jax.experimental.pallas import tpu as pltpu

IN_FEATURES = 784
HIDDEN = 256
OUT_FEATURES = 10
OUT_PAD = 128   # lane-dense output width (real columns: first 10)


def _round_up(x, m):
    return ((x + m - 1) // m) * m


def mlp_kernel(x_ref, w1_ref, b1_ref, w2_ref, b2_ref, o_ref):
    # x_ref:  (TM, 784)  f32   -> cast to bf16 in-kernel (VPU) for the MXU
    # w1_ref: (784, 256) bf16     b1_ref: (1, 256) f32
    # w2_ref: (256, 128) bf16     b2_ref: (1, 128) f32
    # o_ref:  (TM, 128)
    x = x_ref[...].astype(jnp.bfloat16)
    h = jnp.dot(x, w1_ref[...], preferred_element_type=jnp.float32)
    h = jnp.maximum(h + b1_ref[...], 0.0)                 # bias + ReLU in f32 (VPU)
    out = jnp.dot(h.astype(w2_ref.dtype), w2_ref[...],
                  preferred_element_type=jnp.float32)
    o_ref[...] = (out + b2_ref[...]).astype(o_ref.dtype)


def mlp_forward(x, w1p, b1, w2p, b2p, tm=2048, out_dtype=jnp.float32):
    """x: (B, 784) f32, unpadded. Returns (B, 10) in out_dtype.

    out_dtype=jnp.bfloat16 halves output writeback traffic if f32 isn't needed
    downstream (output width stays OUT_PAD=128 for unmasked lane-dense stores).
    """
    B = x.shape[0]
    # Shrink the tile for small batches and guarantee >=2 grid steps when B > 8
    # so both v7x TensorCores get work; no-op on single-TC v5e/v6e.
    tm = max(8, min(tm, _round_up(pl.cdiv(B, 2), 8)))
    grid = (pl.cdiv(B, tm),)

    out = pl.pallas_call(
        mlp_kernel,
        out_shape=jax.ShapeDtypeStruct((B, OUT_PAD), out_dtype),
        grid=grid,
        in_specs=[
            pl.BlockSpec((tm, IN_FEATURES), lambda i: (i, 0)),      # x tile (pipelined)
            pl.BlockSpec((IN_FEATURES, HIDDEN), lambda i: (0, 0)),  # w1 resident
            pl.BlockSpec((1, HIDDEN), lambda i: (0, 0)),            # b1 resident
            pl.BlockSpec((HIDDEN, OUT_PAD), lambda i: (0, 0)),      # w2 resident
            pl.BlockSpec((1, OUT_PAD), lambda i: (0, 0)),           # b2 resident
        ],
        out_specs=pl.BlockSpec((tm, OUT_PAD), lambda i: (i, 0)),
        compiler_params=pltpu.CompilerParams(
            dimension_semantics=("parallel",),
            # ~tm*8.7 KiB of tiles/buffers (~20 MiB at tm=2048): raise past v5e's
            # 16-MiB scoped default while keeping headroom under v7x's 64-MiB VMEM.
            vmem_limit_bytes=48 * 1024 * 1024,
        ),
    )(x, w1p, b1, w2p, b2p)

    return out[:, :OUT_FEATURES]


def init_params(key):
    # Deterministic init mimicking PyTorch's default nn.Linear init:
    # U(-1/sqrt(fan_in), 1/sqrt(fan_in)). Stored unpadded, f32.
    k1, k2, k3, k4 = jax.random.split(key, 4)
    bound1 = 1.0 / (IN_FEATURES ** 0.5)
    bound2 = 1.0 / (HIDDEN ** 0.5)
    w1 = jax.random.uniform(k1, (IN_FEATURES, HIDDEN), jnp.float32, -bound1, bound1)
    b1 = jax.random.uniform(k2, (1, HIDDEN), jnp.float32, -bound1, bound1)
    w2 = jax.random.uniform(k3, (HIDDEN, OUT_FEATURES), jnp.float32, -bound2, bound2)
    b2 = jax.random.uniform(k4, (1, OUT_FEATURES), jnp.float32, -bound2, bound2)
    return w1, b1, w2, b2


def pack_params(w1, b1, w2, b2):
    # One-time host-side packing: weights to bf16 (they are MXU inputs; halves
    # resident-weight HBM traffic), second-layer N padded 10 -> 128. Biases stay f32.
    w1p = w1.astype(jnp.bfloat16)
    w2p = jnp.pad(w2, ((0, 0), (0, OUT_PAD - OUT_FEATURES))).astype(jnp.bfloat16)
    b2p = jnp.pad(b2, ((0, 0), (0, OUT_PAD - OUT_FEATURES)))
    return w1p, b1, w2p, b2p


if __name__ == "__main__":
    key = jax.random.PRNGKey(0)
    kx, kp = jax.random.split(key)
    w1, b1, w2, b2 = init_params(kp)
    w1p, b1p, w2p, b2p = pack_params(w1, b1, w2, b2)

    def reference(x):
        # Pure-JAX reference using the same bf16-rounded MXU inputs (f32 math).
        x_r = x.astype(jnp.bfloat16).astype(jnp.float32)
        w1_r = w1.astype(jnp.bfloat16).astype(jnp.float32)
        w2_r = w2.astype(jnp.bfloat16).astype(jnp.float32)
        h_r = jnp.maximum(x_r @ w1_r + b1, 0.0)
        return h_r.astype(jnp.bfloat16).astype(jnp.float32) @ w2_r + b2

    ok = True
    # batch=2 matches the module's toy usage; 200 exercises the masked
    # (non-tile-multiple) boundary block and the >=2-step grid path.
    for batch in (2, 200):
        kx, sub = jax.random.split(kx)
        x = jax.random.uniform(sub, (batch, IN_FEATURES), jnp.float32)  # like torch.rand
        out = jax.block_until_ready(mlp_forward(x, w1p, b1p, w2p, b2p))
        ref = reference(x)
        ok &= out.shape == (batch, OUT_FEATURES)
        ok &= bool(jnp.allclose(out, ref, atol=1e-2, rtol=1e-2))

    assert ok
    print("KERNEL_OK")
</pallas_src>

<mosaic_0001>
module attributes {stable_mosaic.version = 11 : i64} {
  func.func @mlp_kernel(%arg0: i32, %arg1: memref<8x784xf32, #tpu.memory_space<vmem>>, %arg2: memref<784x256xbf16, #tpu.memory_space<vmem>>, %arg3: memref<1x256xf32, #tpu.memory_space<vmem>>, %arg4: memref<256x128xbf16, #tpu.memory_space<vmem>>, %arg5: memref<1x128xf32, #tpu.memory_space<vmem>>, %arg6: memref<8x128xf32, #tpu.memory_space<vmem>>) attributes {dimension_semantics = [#tpu.dimension_semantics<parallel>], iteration_bounds = array<i64: 1>, scalar_prefetch = 0 : i64, scratch_operands = 0 : i64, tpu.core_type = #tpu.core_type<tc>, window_params = [{transform_indices = @transform_0, window_bounds = array<i64: 8, 784>}, {pipeline_mode = #tpu.pipeline_mode<synchronous>, transform_indices = @transform_1, window_bounds = array<i64: 784, 256>}, {pipeline_mode = #tpu.pipeline_mode<synchronous>, transform_indices = @transform_2, window_bounds = array<i64: 1, 256>}, {pipeline_mode = #tpu.pipeline_mode<synchronous>, transform_indices = @transform_3, window_bounds = array<i64: 256, 128>}, {pipeline_mode = #tpu.pipeline_mode<synchronous>, transform_indices = @transform_4, window_bounds = array<i64: 1, 128>}, {transform_indices = @transform_5, window_bounds = array<i64: 8, 128>}]} {
    %c0 = arith.constant 0 : index
    %c0_0 = arith.constant 0 : index
    %0 = vector.load %arg1[%c0, %c0_0] : memref<8x784xf32, #tpu.memory_space<vmem>>, vector<8x784xf32>
    %1 = arith.truncf %0 : vector<8x784xf32> to vector<8x784xbf16>
    %c0_1 = arith.constant 0 : index
    %c0_2 = arith.constant 0 : index
    %2 = vector.load %arg2[%c0_1, %c0_2] : memref<784x256xbf16, #tpu.memory_space<vmem>>, vector<784x256xbf16>
    %cst = arith.constant dense<0.000000e+00> : vector<8x256xf32>
    %3 = tpu.matmul %1, %2, %cst {dimension_numbers = #tpu.dot_dimension_numbers<[1], [0], [0], [1], [0, 0, 1, 1], [], []>} : vector<8x784xbf16>, vector<784x256xbf16>, vector<8x256xf32> -> vector<8x256xf32>
    %c0_3 = arith.constant 0 : index
    %c0_4 = arith.constant 0 : index
    %4 = vector.load %arg3[%c0_3, %c0_4] : memref<1x256xf32, #tpu.memory_space<vmem>>, vector<1x256xf32>
    %5 = vector.broadcast %4 : vector<1x256xf32> to vector<8x256xf32>
    %6 = arith.addf %3, %5 : vector<8x256xf32>
    %cst_5 = arith.constant 0.000000e+00 : f32
    %7 = vector.broadcast %cst_5 : f32 to vector<8x256xf32>
    %8 = arith.maximumf %6, %7 : vector<8x256xf32>
    %9 = arith.truncf %8 : vector<8x256xf32> to vector<8x256xbf16>
    %c0_6 = arith.constant 0 : index
    %c0_7 = arith.constant 0 : index
    %10 = vector.load %arg4[%c0_6, %c0_7] : memref<256x128xbf16, #tpu.memory_space<vmem>>, vector<256x128xbf16>
    %cst_8 = arith.constant dense<0.000000e+00> : vector<8x128xf32>
    %11 = tpu.matmul %9, %10, %cst_8 {dimension_numbers = #tpu.dot_dimension_numbers<[1], [0], [0], [1], [0, 0, 1, 1], [], []>} : vector<8x256xbf16>, vector<256x128xbf16>, vector<8x128xf32> -> vector<8x128xf32>
    %c0_9 = arith.constant 0 : index
    %c0_10 = arith.constant 0 : index
    %12 = vector.load %arg5[%c0_9, %c0_10] : memref<1x128xf32, #tpu.memory_space<vmem>>, vector<1x128xf32>
    %13 = vector.broadcast %12 : vector<1x128xf32> to vector<8x128xf32>
    %14 = arith.addf %11, %13 : vector<8x128xf32>
    %c0_11 = arith.constant 0 : index
    %c0_12 = arith.constant 0 : index
    %15 = vector.load %arg6[%c0_11, %c0_12] : memref<8x128xf32, #tpu.memory_space<vmem>>, vector<8x128xf32>
    tpu.vector_store %arg6[%c0_11, %c0_12], %14 {strides = array<i32>} : memref<8x128xf32, #tpu.memory_space<vmem>>, vector<8x128xf32>,
    return
  }
  func.func @transform_0(%arg0: i32) -> (i32, i32) {
    %c0_i32 = arith.constant 0 : i32
    %c0_i32_0 = arith.constant 0 : i32
    return %arg0, %c0_i32 : i32, i32
  }
  func.func @transform_1(%arg0: i32) -> (i32, i32) {
    %c0_i32 = arith.constant 0 : i32
    %c0_i32_0 = arith.constant 0 : i32
    %c0_i32_1 = arith.constant 0 : i32
    return %c0_i32, %c0_i32_0 : i32, i32
  }
  func.func @transform_2(%arg0: i32) -> (i32, i32) {
    %c0_i32 = arith.constant 0 : i32
    %c0_i32_0 = arith.constant 0 : i32
    %c0_i32_1 = arith.constant 0 : i32
    return %c0_i32, %c0_i32_0 : i32, i32
  }
  func.func @transform_3(%arg0: i32) -> (i32, i32) {
    %c0_i32 = arith.constant 0 : i32
    %c0_i32_0 = arith.constant 0 : i32
    %c0_i32_1 = arith.constant 0 : i32
    return %c0_i32, %c0_i32_0 : i32, i32
  }
  func.func @transform_4(%arg0: i32) -> (i32, i32) {
    %c0_i32 = arith.constant 0 : i32
    %c0_i32_0 = arith.constant 0 : i32
    %c0_i32_1 = arith.constant 0 : i32
    return %c0_i32, %c0_i32_0 : i32, i32
  }
  func.func @transform_5(%arg0: i32) -> (i32, i32) {
    %c0_i32 = arith.constant 0 : i32
    %c0_i32_0 = arith.constant 0 : i32
    return %arg0, %c0_i32 : i32, i32
  }
}

</mosaic_0001>

<bundles_post_ra>
// kernel: tpu_custom_call.1
= control target key start
LH: loop header
LB: loop body
LE: loop exit
PB: predicated region body
PF: predicated region fallthrough
CT: control target
= control target key end

     0   :  { %10 = vsyncpa [#allocation3], 0  ;;  %s1904_s0 = inlined_call_operand.hbm [shape: f32[2,784], index: 0, kind: input, shape index: {}]   ;;  %s1905_s1 = inlined_call_operand.hbm [shape: bf16[784,256], index: 1, kind: input, shape index: {}]   ;;  %s1906_s2 = inlined_call_operand.hbm [shape: f32[1,256], index: 2, kind: input, shape index: {}]   ;;  %s1907_s3 = inlined_call_operand.hbm [shape: bf16[256,128], index: 3, kind: input, shape index: {}]   ;;  %s1908_s4 = inlined_call_operand.vmem [shape: f32[1,128], index: 4, kind: input, shape index: {}]   ;;  %s1909_s5 = inlined_call_operand.hbm [shape: f32[2,128], index: 5, kind: output, shape index: {}]  }
   0x1   :  { %11 = vsyncpa [#allocation6], 0 }
   0x2   :  { %12 = vsyncpa [#allocation9], 0 }
   0x3   :  { %13 = vsyncpa [#allocation4], 0  ;;  %s31_s20 = sshll.u32 %s1905_s1, 4  ;;  %s32_s20 = int_to_ptr.hbm [resolvable:$true] %s31_s20 }
   0x4   :  { %17 = vsyncadd [#allocation3], 672  ;;  %s1813_s21 = smov [#allocation5]   ;;  %s18_s25 = sshll.u32 %s1904_s0, 4  ;;  %s19_s25 = int_to_ptr.hbm [resolvable:$true] %s18_s25 }
   0x5   :  { %s33_s22 = sshll.u32 %s1813_s21, 4  ;;  %s1814_s26 = smov 128   ;;  %s34_s22 = int_to_ptr.vmem [resolvable:$true] %s33_s22 }
   0x6   :  { %s1815_s27 = smov 8   ;;  %s1816_s28 = smov [#allocation2]  }
   0x7   :  { %39 = dma.hbm_to_vmem [thread:$0]  %s32_s20, 12544, %s34_s22, [#allocation6], %s1814_s26, %s1814_s26, %s1815_s27  }
   0x8   :  { %s20_s29 = sshll.u32 %s1816_s28, 4  ;;  %s1817_s30 = smov 224   ;;  %s21_s29 = int_to_ptr.vmem [resolvable:$true] %s20_s29 }
   0x9   :  { %s1818_s6 = smov 14   ;;  %s45_s8 = sshll.u32 %s1906_s2, 4  ;;  %s46_s8 = int_to_ptr.hbm [resolvable:$true] %s45_s8 }
   0xa   :  { %26 = dma.hbm_to_vmem [thread:$0]  %s19_s25, 224, %s21_s29, [#allocation3], %s1817_s30, %s1817_s30, %s1818_s6  }
   0xb   :  { %s1819_s9 = smov [#allocation7]   ;;  %s55_s12 = sshll.u32 %s1907_s3, 4  ;;  %s56_s12 = int_to_ptr.hbm [resolvable:$true] %s55_s12 }
   0xc   :  { %s47_s10 = sshll.u32 %s1819_s9, 4  ;;  %s1820_s13 = smov [#allocation8]   ;;  %s48_s10 = int_to_ptr.vmem [resolvable:$true] %s47_s10 }
   0xd   :  { %50 = dma.hbm_to_vmem [thread:$0]  %s46_s8, 32, %s48_s10, [#allocation6]  }
   0xe   :  { %s57_s14 = sshll.u32 %s1820_s13, 4  ;;  %s1821_s15 = smov 64   ;;  %s58_s14 = int_to_ptr.vmem [resolvable:$true] %s57_s14 }
   0xf   :  { %s1822_s16 = smov 4  }
  0x10   :  { %63 = dma.hbm_to_vmem [thread:$0]  %s56_s12, 2048, %s58_s14, [#allocation9], %s1821_s15, %s1821_s15, %s1822_s16  }
  0x11   :  { %1805 = dma.done.wait [#allocation3], 896  }
  0x12   :  { %1806 = vsyncadd [#allocation3], 4294966400 }
  0x13   :  { %1807 = dma.done.wait [#allocation6], 12576  }
  0x14   :  { %1808 = vsyncadd [#allocation6], 4294954720 }
  0x15   :  { %1809 = dma.done.wait [#allocation9], 2048  }
  0x16   :  { %1810 = vsyncadd [#allocation9], 4294965248  ;;  %v1157_v0 = vld [vmem:[#allocation5 + $0x70] sm:$0xf]  ;;  %v1572_v1 = vld [vmem:[#allocation5 + $0x74] sm:$0xf0] }
  0x17   :  { %v1285_v2 = vld [vmem:[#allocation5 + $0x170] sm:$0xf]  ;;  %v1158_v3 = vor.u32 %v1572_v1, %v1157_v0  ;;  %v1604_v4 = vld [vmem:[#allocation5 + $0x174] sm:$0xf0]  ;;  %v1149_v11 = vld [vmem:[#allocation5 + $0x60] sm:$0xf] }
  0x18   :  { %v1349_v5 = vld [vmem:[#allocation5 + $0x1f0] sm:$0xf]  ;;  %v1620_v6 = vld [vmem:[#allocation5 + $0x1f4] sm:$0xf0]  ;;  %v1286_v7 = vor.u32 %v1604_v4, %v1285_v2  ;;  %v1570_v13 = vld [vmem:[#allocation5 + $0x64] sm:$0xf0] }
  0x19   :  { %v1350_v8 = vor.u32 %v1620_v6, %v1349_v5  ;;  %v1221_v9 = vld [vmem:[#allocation5 + $0xf0] sm:$0xf]  ;;  %v1588_v10 = vld [vmem:[#allocation5 + $0xf4] sm:$0xf0]  ;;  %733 = vmatpush.bf16.msra.mxu0 %v1158_v3  ;;  %v1277_v14 = vld [vmem:[#allocation5 + $0x160] sm:$0xf]  ;;  %v1150_v16 = vor.u32 %v1570_v13, %v1149_v11 }
  0x1a   :  { %v1222_v12 = vor.u32 %v1588_v10, %v1221_v9  ;;  %v1602_v15 = vld [vmem:[#allocation5 + $0x164] sm:$0xf0]  ;;  %759 = vmatpush.bf16.msra.mxu2 %v1286_v7  ;;  %v1341_v18 = vld [vmem:[#allocation5 + $0x1e0] sm:$0xf]  ;;  %v1141_v23 = vld [vmem:[#allocation5 + $0x50] sm:$0xf] }
  0x1b   :  { %772 = vmatpush.bf16.msra.mxu3 %v1350_v8  ;;  %v1278_v17 = vor.u32 %v1602_v15, %v1277_v14  ;;  %v1618_v19 = vld [vmem:[#allocation5 + $0x1e4] sm:$0xf0]  ;;  %v1213_v20 = vld [vmem:[#allocation5 + $0xe0] sm:$0xf]  ;;  %v1568_v24 = vld [vmem:[#allocation5 + $0x54] sm:$0xf0] }
  0x1c   :  { %746 = vmatpush.bf16.msra.mxu1 %v1222_v12  ;;  %v1342_v21 = vor.u32 %v1618_v19, %v1341_v18  ;;  %v1586_v22 = vld [vmem:[#allocation5 + $0xe4] sm:$0xf0]  ;;  %v1269_v26 = vld [vmem:[#allocation5 + $0x150] sm:$0xf]  ;;  %v1600_v27 = vld [vmem:[#allocation5 + $0x154] sm:$0xf0]  ;;  %v1142_v29 = vor.u32 %v1568_v24, %v1141_v23 }
  0x1d   :  { %v1214_v25 = vor.u32 %v1586_v22, %v1213_v20  ;;  %v1333_v28 = vld [vmem:[#allocation5 + $0x1d0] sm:$0xf]  ;;  %734 = vmatpush.bf16.msra.mxu0 %v1150_v16  ;;  %v1616_v30 = vld [vmem:[#allocation5 + $0x1d4] sm:$0xf0]  ;;  %v1270_v33 = vor.u32 %v1600_v27, %v1269_v26  ;;  %v1133_v35 = vld [vmem:[#allocation5 + $0x40] sm:$0xf] }
  0x1e   :  { %v1205_v31 = vld [vmem:[#allocation5 + $0xd0] sm:$0xf]  ;;  %v1584_v32 = vld [vmem:[#allocation5 + $0xd4] sm:$0xf0]  ;;  %760 = vmatpush.bf16.msra.mxu2 %v1278_v17  ;;  %v1334_v34 = vor.u32 %v1616_v30, %v1333_v28  ;;  %v1566_v36 = vld [vmem:[#allocation5 + $0x44] sm:$0xf0] }
  0x1f   :  { %773 = vmatpush.bf16.msra.mxu3 %v1342_v21  ;;  %v1261_v37 = vld [vmem:[#allocation5 + $0x140] sm:$0xf]  ;;  %v1206_v38 = vor.u32 %v1584_v32, %v1205_v31  ;;  %v1598_v39 = vld [vmem:[#allocation5 + $0x144] sm:$0xf0]  ;;  %v1134_v44 = vor.u32 %v1566_v36, %v1133_v35  ;;  %v1125_v47 = vld [vmem:[#allocation5 + $0x30] sm:$0xf] }
  0x20   :  { %747 = vmatpush.bf16.msra.mxu1 %v1214_v25  ;;  %v1325_v40 = vld [vmem:[#allocation5 + $0x1c0] sm:$0xf]  ;;  %v1614_v41 = vld [vmem:[#allocation5 + $0x1c4] sm:$0xf0]  ;;  %v1262_v45 = vor.u32 %v1598_v39, %v1261_v37  ;;  %v1564_v48 = vld [vmem:[#allocation5 + $0x34] sm:$0xf0] }
  0x21   :  { %v1197_v42 = vld [vmem:[#allocation5 + $0xc0] sm:$0xf]  ;;  %v1582_v43 = vld [vmem:[#allocation5 + $0xc4] sm:$0xf0]  ;;  %735 = vmatpush.bf16.msra.mxu0 %v1142_v29  ;;  %v1326_v46 = vor.u32 %v1614_v41, %v1325_v40  ;;  %v1253_v49 = vld [vmem:[#allocation5 + $0x130] sm:$0xf]  ;;  %v1126_v56 = vor.u32 %v1564_v48, %v1125_v47 }
  0x22   :  { %761 = vmatpush.bf16.msra.mxu2 %v1270_v33  ;;  %v1198_v50 = vor.u32 %v1582_v43, %v1197_v42  ;;  %v1596_v51 = vld [vmem:[#allocation5 + $0x134] sm:$0xf0]  ;;  %v1317_v52 = vld [vmem:[#allocation5 + $0x1b0] sm:$0xf]  ;;  %v1117_v59 = vld [vmem:[#allocation5 + $0x20] sm:$0xf] }
  0x23   :  { %774 = vmatpush.bf16.msra.mxu3 %v1334_v34  ;;  %v1612_v53 = vld [vmem:[#allocation5 + $0x1b4] sm:$0xf0]  ;;  %v1189_v54 = vld [vmem:[#allocation5 + $0xb0] sm:$0xf]  ;;  %v1254_v57 = vor.u32 %v1596_v51, %v1253_v49  ;;  %v1562_v60 = vld [vmem:[#allocation5 + $0x24] sm:$0xf0] }
  0x24   :  { %748 = vmatpush.bf16.msra.mxu1 %v1206_v38  ;;  %v1580_v55 = vld [vmem:[#allocation5 + $0xb4] sm:$0xf0]  ;;  %v1318_v58 = vor.u32 %v1612_v53, %v1317_v52  ;;  %v1245_v61 = vld [vmem:[#allocation5 + $0x120] sm:$0xf]  ;;  %v1594_v63 = vld [vmem:[#allocation5 + $0x124] sm:$0xf0]  ;;  %v1118_v4 = vor.u32 %v1562_v60, %v1117_v59 }
  0x25   :  { %736 = vmatpush.bf16.msra.mxu0 %v1134_v44  ;;  %v1190_v62 = vor.u32 %v1580_v55, %v1189_v54  ;;  %v1309_v0 = vld [vmem:[#allocation5 + $0x1a0] sm:$0xf]  ;;  %v1610_v1 = vld [vmem:[#allocation5 + $0x1a4] sm:$0xf0]  ;;  %v1109_v5 = vld [vmem:[#allocation5 + $0x10] sm:$0xf]  ;;  %v1246_v7 = vor.u32 %v1594_v63, %v1245_v61 }
  0x26   :  { %762 = vmatpush.bf16.msra.mxu2 %v1262_v45  ;;  %v1181_v2 = vld [vmem:[#allocation5 + $0xa0] sm:$0xf]  ;;  %v1578_v3 = vld [vmem:[#allocation5 + $0xa4] sm:$0xf0]  ;;  %v1560_v6 = vld [vmem:[#allocation5 + $0x14] sm:$0xf0]  ;;  %v1310_v8 = vor.u32 %v1610_v1, %v1309_v0 }
  0x27   :  { %775 = vmatpush.bf16.msra.mxu3 %v1326_v46  ;;  %v1237_v9 = vld [vmem:[#allocation5 + $0x110] sm:$0xf]  ;;  %v1592_v10 = vld [vmem:[#allocation5 + $0x114] sm:$0xf0]  ;;  %v1182_v12 = vor.u32 %v1578_v3, %v1181_v2  ;;  %v1101_v16 = vld [vmem:[#allocation5] sm:$0xf]  ;;  %v1110_v19 = vor.u32 %v1560_v6, %v1109_v5 }
  0x28   :  { %749 = vmatpush.bf16.msra.mxu1 %v1198_v50  ;;  %v1301_v11 = vld [vmem:[#allocation5 + $0x190] sm:$0xf]  ;;  %v1608_v13 = vld [vmem:[#allocation5 + $0x194] sm:$0xf0]  ;;  %v1558_v17 = vld [vmem:[#allocation5 + $0x4] sm:$0xf0]  ;;  %v1238_v26 = vor.u32 %v1592_v10, %v1237_v9 }
  0x29   :  { %737 = vmatpush.bf16.msra.mxu0 %v1126_v56  ;;  %v1173_v14 = vld [vmem:[#allocation5 + $0x90] sm:$0xf]  ;;  %v1576_v15 = vld [vmem:[#allocation5 + $0x94] sm:$0xf0]  ;;  %v83_v18 = vld [vmem:[#allocation2] sm:$0xff]  ;;  %v1302_v27 = vor.u32 %v1608_v13, %v1301_v11  ;;  %v1102_v35 = vor.u32 %v1558_v17, %v1101_v16  ;;  %vm729_vm0 = vcmask 130048  }
  0x2a   :  { %763 = vmatpush.bf16.msra.mxu2 %v1254_v57  ;;  %v1229_v20 = vld [vmem:[#allocation5 + $0x100] sm:$0xf]  ;;  %v1590_v21 = vld [vmem:[#allocation5 + $0x104] sm:$0xf0]  ;;  %v85_v23 = vld [vmem:[#allocation2 + $0xe] sm:$0xff]  ;;  %v1174_v30 = vor.u32 %v1576_v15, %v1173_v14 }
  0x2b   :  { %776 = vmatpush.bf16.msra.mxu3 %v1318_v58  ;;  %v1293_v22 = vld [vmem:[#allocation5 + $0x180] sm:$0xf]  ;;  %v87_v24 = vld [vmem:[#allocation2 + $0x1c] sm:$0xff]  ;;  %v89_v25 = vld [vmem:[#allocation2 + $0x2a] sm:$0xff]  ;;  %99 = vst [vmem:[#allocation1] ss:$4 sm:$0xff] %v83_v18  ;;  %v1230_v39 = vor.u32 %v1590_v21, %v1229_v20 }
  0x2c   :  { %750 = vmatpush.bf16.msra.mxu1 %v1190_v62  ;;  %v1606_v28 = vld [vmem:[#allocation5 + $0x184] sm:$0xf0]  ;;  %v1413_v29 = vld [vmem:[#allocation5 + $0x270] sm:$0xf]  ;;  %101 = vst [vmem:[#allocation1 + $0x1] ss:$4 sm:$0xff] %v85_v23 }
  0x2d   :  { %738 = vmatpush.bf16.msra.mxu0 %v1118_v4  ;;  %v1636_v31 = vld [vmem:[#allocation5 + $0x274] sm:$0xf0]  ;;  %v1571_v32 = vld [vmem:[#allocation5 + $0x74] sm:$0xf]  ;;  %103 = vst [vmem:[#allocation1 + $0x2] ss:$4 sm:$0xff] %v87_v24  ;;  %v1294_v40 = vor.u32 %v1606_v28, %v1293_v22 }
  0x2e   :  { %764 = vmatpush.bf16.msra.mxu2 %v1246_v7  ;;  %v1159_v33 = vld [vmem:[#allocation5 + $0x78] sm:$0xf0]  ;;  %v1165_v34 = vld [vmem:[#allocation5 + $0x80] sm:$0xf]  ;;  %105 = vst [vmem:[#allocation1 + $0x3] ss:$4 sm:$0xff] %v89_v25  ;;  %v1414_v43 = vor.u32 %v1636_v31, %v1413_v29 }
  0x2f   :  { %777 = vmatpush.bf16.msra.mxu3 %v1310_v8  ;;  %v1574_v36 = vld [vmem:[#allocation5 + $0x84] sm:$0xf0]  ;;  %v1485_v37 = vld [vmem:[#allocation5 + $0x300] sm:$0xf]  ;;  %v1477_v41 = vld [vmem:[#allocation5 + $0x2f0] sm:$0xf]  ;;  %v1162_v44 = vor.u32 %v1571_v32, %v1159_v33 }
  0x30   :  { %751 = vmatpush.bf16.msra.mxu1 %v1182_v12  ;;  %v1654_v38 = vld [vmem:[#allocation5 + $0x304] sm:$0xf0]  ;;  %v1652_v42 = vld [vmem:[#allocation5 + $0x2f4] sm:$0xf0]  ;;  %v1587_v45 = vld [vmem:[#allocation5 + $0xf4] sm:$0xf]  ;;  %v1166_v47 = vor.u32 %v1574_v36, %v1165_v34 }
  0x31   :  { %739 = vmatpush.bf16.msra.mxu0 %v1110_v19  ;;  %v1223_v46 = vld [vmem:[#allocation5 + $0xf8] sm:$0xf0]  ;;  %v1486_v48 = vor.u32 %v1654_v38, %v1485_v37  ;;  %v1405_v49 = vld [vmem:[#allocation5 + $0x260] sm:$0xf]  ;;  %v1634_v50 = vld [vmem:[#allocation5 + $0x264] sm:$0xf0]  ;;  %v1478_v52 = vor.u32 %v1652_v42, %v1477_v41 }
  0x32   :  { %765 = vmatpush.bf16.msra.mxu2 %v1238_v26  ;;  %v1569_v51 = vld [vmem:[#allocation5 + $0x64] sm:$0xf]  ;;  %v1151_v53 = vld [vmem:[#allocation5 + $0x68] sm:$0xf0]  ;;  %v1469_v54 = vld [vmem:[#allocation5 + $0x2e0] sm:$0xf]  ;;  %v1226_v61 = vor.u32 %v1587_v45, %v1223_v46  ;;  %v1406_v62 = vor.u32 %v1634_v50, %v1405_v49 }
  0x33   :  { %778 = vmatpush.bf16.msra.mxu3 %v1302_v27  ;;  %v1650_v55 = vld [vmem:[#allocation5 + $0x2e4] sm:$0xf0]  ;;  %v1585_v56 = vld [vmem:[#allocation5 + $0xe4] sm:$0xf]  ;;  %v1215_v57 = vld [vmem:[#allocation5 + $0xe8] sm:$0xf0]  ;;  %v1154_v1 = vor.u32 %v1569_v51, %v1151_v53 }
  0x34   :  { %752 = vmatpush.bf16.msra.mxu1 %v1174_v30  ;;  %v1397_v58 = vld [vmem:[#allocation5 + $0x250] sm:$0xf]  ;;  %v1632_v59 = vld [vmem:[#allocation5 + $0x254] sm:$0xf0]  ;;  %v1470_v5 = vor.u32 %v1650_v55, %v1469_v54  ;;  %v1567_v6 = vld [vmem:[#allocation5 + $0x54] sm:$0xf]  ;;  %v1218_v12 = vor.u32 %v1585_v56, %v1215_v57 }
  0x35   :  { %740 = vmatpush.bf16.msra.mxu0 %v1102_v35  ;;  %v116_v60 = vld.sshfl [vmem:[#allocation1 + $0x10] sm:$0xff pattern:$0x73625140]  ;;  %v114_v63 = vld.sshfl [vmem:[#allocation1] sm:$0xff pattern:$0x73625140]  ;;  %v1398_v13 = vor.u32 %v1632_v59, %v1397_v58 }
  0x36   :  { %766 = vmatpush.bf16.msra.mxu2 %v1230_v39  ;;  %v1868_v0 = vpack.c.bf16 %v116_v60, %v116_v60  ;;  %v1870_v2 = vpack.c.bf16 %v114_v63, %v114_v63  ;;  %v117_v3 = vld.sshfl [vmem:[#allocation1 + $0x18] sm:$0xff pattern:$0x73625140]  ;;  %v115_v4 = vld.sshfl [vmem:[#allocation1 + $0x8] sm:$0xff pattern:$0x73625140] }
  0x37   :  { %779 = vmatpush.bf16.msra.mxu3 %v1294_v40  ;;  %v1143_v7 = vld [vmem:[#allocation5 + $0x58] sm:$0xf0]  ;;  %v1872_v8 = vpack.c.bf16 %v117_v3, %v117_v3  ;;  %v1874_v9 = vpack.c.bf16 %v115_v4, %v115_v4  ;;  %v1461_v10 = vld [vmem:[#allocation5 + $0x2d0] sm:$0xf]  ;;  %v1648_v11 = vld [vmem:[#allocation5 + $0x2d4] sm:$0xf0] }
  0x38   :  { %753 = vmatpush.bf16.msra.mxu1 %v1166_v47  ;;  %741 = vmatmul.bf16.vlgmr.msra.gmra.mxu0 %v1870_v2  ;;  %v1583_v14 = vld [vmem:[#allocation5 + $0xd4] sm:$0xf]  ;;  %v1146_v15 = vor.u32 %v1567_v6, %v1143_v7  ;;  %v1207_v16 = vld [vmem:[#allocation5 + $0xd8] sm:$0xf0]  ;;  %v1389_v17 = vld [vmem:[#allocation5 + $0x240] sm:$0xf]  ;;  %v1462_v19 = vor.u32 %v1648_v11, %v1461_v10 }
  0x39   :  { %785 = vmatpush.bf16.msrb.mxu0 %v1414_v43  ;;  %767 = vmatmul.bf16.vlgmr.msra.gmra.mxu2 %v1868_v0  ;;  %v1630_v18 = vld [vmem:[#allocation5 + $0x244] sm:$0xf0]  ;;  %v1565_v20 = vld [vmem:[#allocation5 + $0x44] sm:$0xf]  ;;  %v1135_v21 = vld [vmem:[#allocation5 + $0x48] sm:$0xf0]  ;;  %v1210_v24 = vor.u32 %v1583_v14, %v1207_v16 }
  0x3a   :  { %818 = vmatpush.bf16.msrb.mxu2 %v1486_v48  ;;  %780 = vmatmul.bf16.vlgmr.msra.gmra.mxu3 %v1872_v8  ;;  %v1453_v22 = vld [vmem:[#allocation5 + $0x2c0] sm:$0xf]  ;;  %v1646_v23 = vld [vmem:[#allocation5 + $0x2c4] sm:$0xf0]  ;;  %v1390_v25 = vor.u32 %v1630_v18, %v1389_v17  ;;  %v1581_v26 = vld [vmem:[#allocation5 + $0xc4] sm:$0xf]  ;;  %v1138_v28 = vor.u32 %v1565_v20, %v1135_v21 }
  0x3b   :  { %824 = vmatpush.bf16.msrb.mxu3 %v1162_v44  ;;  %754 = vmatmul.bf16.vlgmr.msra.gmra.mxu1 %v1874_v9  ;;  %v1199_v27 = vld [vmem:[#allocation5 + $0xc8] sm:$0xf0]  ;;  %v1381_v29 = vld [vmem:[#allocation5 + $0x230] sm:$0xf]  ;;  %v1628_v30 = vld [vmem:[#allocation5 + $0x234] sm:$0xf0]  ;;  %v1454_v32 = vor.u32 %v1646_v23, %v1453_v22 }
  0x3c   :  { %798 = vmatpush.bf16.msrb.mxu1 %v1478_v52  ;;  %v1563_v31 = vld [vmem:[#allocation5 + $0x34] sm:$0xf]  ;;  %v1127_v33 = vld [vmem:[#allocation5 + $0x38] sm:$0xf0]  ;;  %v1445_v34 = vld [vmem:[#allocation5 + $0x2b0] sm:$0xf]  ;;  %v1202_v39 = vor.u32 %v1581_v26, %v1199_v27  ;;  %v1382_v40 = vor.u32 %v1628_v30, %v1381_v29 }
  0x3d   :  { %786 = vmatpush.bf16.msrb.mxu0 %v1406_v62  ;;  %v1644_v35 = vld [vmem:[#allocation5 + $0x2b4] sm:$0xf0]  ;;  %v1579_v36 = vld [vmem:[#allocation5 + $0xb4] sm:$0xf]  ;;  %v1191_v37 = vld [vmem:[#allocation5 + $0xb8] sm:$0xf0]  ;;  %v1130_v44 = vor.u32 %v1563_v31, %v1127_v33 }
  0x3e   :  { %837 = vmatpush.bf16.msra.mxu2 %v1226_v61  ;;  %v1373_v38 = vld [vmem:[#allocation5 + $0x220] sm:$0xf]  ;;  %v1626_v41 = vld [vmem:[#allocation5 + $0x224] sm:$0xf0]  ;;  %v1561_v42 = vld [vmem:[#allocation5 + $0x24] sm:$0xf]  ;;  %v1446_v48 = vor.u32 %v1644_v35, %v1445_v34  ;;  %v1194_v53 = vor.u32 %v1579_v36, %v1191_v37 }
  0x3f   :  { %825 = vmatpush.bf16.msrb.mxu3 %v1154_v1  ;;  %v84_v43 = vld [vmem:[#allocation2 + $0x8] sm:$0x3f]  ;;  %v1119_v45 = vld [vmem:[#allocation5 + $0x28] sm:$0xf0]  ;;  %v86_v46 = vld [vmem:[#allocation2 + $0x16] sm:$0x3f]  ;;  %v1374_v54 = vor.u32 %v1626_v41, %v1373_v38 }
  0x40   :  { %799 = vmatpush.bf16.msrb.mxu1 %v1470_v5  ;;  %v88_v47 = vld [vmem:[#allocation2 + $0x24] sm:$0x3f]  ;;  %v1437_v49 = vld [vmem:[#allocation5 + $0x2a0] sm:$0xf]  ;;  %v90_v50 = vld [vmem:[#allocation2 + $0x32] sm:$0x3f]  ;;  %v1122_v57 = vor.u32 %v1561_v42, %v1119_v45 }
  0x41   :  { %787 = vmatpush.bf16.msrb.mxu0 %v1398_v13  ;;  %107 = vst [vmem:[#allocation1 + $0x20] ss:$4 sm:$0xff] %v84_v43  ;;  %v1642_v51 = vld [vmem:[#allocation5 + $0x2a4] sm:$0xf0]  ;;  %v1577_v52 = vld [vmem:[#allocation5 + $0xa4] sm:$0xf] }
  0x42   :  { %838 = vmatpush.bf16.msra.mxu2 %v1218_v12  ;;  %109 = vst [vmem:[#allocation1 + $0x21] ss:$4 sm:$0xff] %v86_v46  ;;  %v1183_v55 = vld [vmem:[#allocation5 + $0xa8] sm:$0xf0]  ;;  %v1365_v56 = vld [vmem:[#allocation5 + $0x210] sm:$0xf]  ;;  %v1438_v60 = vor.u32 %v1642_v51, %v1437_v49 }
  0x43   :  { %826 = vmatpush.bf16.msrb.mxu3 %v1146_v15  ;;  %111 = vst [vmem:[#allocation1 + $0x22] ss:$4 sm:$0xff] %v88_v47  ;;  %v1624_v58 = vld [vmem:[#allocation5 + $0x214] sm:$0xf0]  ;;  %v1559_v59 = vld [vmem:[#allocation5 + $0x14] sm:$0xf]  ;;  %v1186_v6 = vor.u32 %v1577_v52, %v1183_v55 }
  0x44   :  { %800 = vmatpush.bf16.msrb.mxu1 %v1462_v19  ;;  %113 = vst [vmem:[#allocation1 + $0x23] ss:$4 sm:$0xff] %v90_v50  ;;  %v1111_v61 = vld [vmem:[#allocation5 + $0x18] sm:$0xf0]  ;;  %v1429_v62 = vld [vmem:[#allocation5 + $0x290] sm:$0xf]  ;;  %v1366_v7 = vor.u32 %v1624_v58, %v1365_v56 }
  0x45   :  { %788 = vmatpush.bf16.msrb.mxu0 %v1390_v25  ;;  %v1640_v63 = vld [vmem:[#allocation5 + $0x294] sm:$0xf0]  ;;  %v1575_v1 = vld [vmem:[#allocation5 + $0x94] sm:$0xf]  ;;  %v1175_v3 = vld [vmem:[#allocation5 + $0x98] sm:$0xf0]  ;;  %v1114_v12 = vor.u32 %v1559_v59, %v1111_v61 }
  0x46   :  { %839 = vmatpush.bf16.msra.mxu2 %v1210_v24  ;;  %v1357_v4 = vld [vmem:[#allocation5 + $0x200] sm:$0xf]  ;;  %v1622_v5 = vld [vmem:[#allocation5 + $0x204] sm:$0xf0]  ;;  %v1557_v10 = vld [vmem:[#allocation5 + $0x4] sm:$0xf]  ;;  %v1430_v16 = vor.u32 %v1640_v63, %v1429_v62  ;;  %v1178_v23 = vor.u32 %v1575_v1, %v1175_v3 }
  0x47   :  { %827 = vmatpush.bf16.msrb.mxu3 %v1138_v28  ;;  %v1103_v11 = vld [vmem:[#allocation5 + $0x8] sm:$0xf0]  ;;  %v1603_v13 = vld [vmem:[#allocation5 + $0x174] sm:$0xf]  ;;  %v1287_v14 = vld [vmem:[#allocation5 + $0x178] sm:$0xf0]  ;;  %v1358_v24 = vor.u32 %v1622_v5, %v1357_v4 }
  0x48   :  { %801 = vmatpush.bf16.msrb.mxu1 %v1454_v32  ;;  %v1635_v15 = vld [vmem:[#allocation5 + $0x274] sm:$0xf]  ;;  %v1415_v17 = vld [vmem:[#allocation5 + $0x278] sm:$0xf0]  ;;  %v1421_v18 = vld [vmem:[#allocation5 + $0x280] sm:$0xf]  ;;  %v1106_v28 = vor.u32 %v1557_v10, %v1103_v11  ;;  %v1290_v29 = vor.u32 %v1603_v13, %v1287_v14 }
  0x49   :  { %789 = vmatpush.bf16.msrb.mxu0 %v1382_v40  ;;  %v1638_v19 = vld [vmem:[#allocation5 + $0x284] sm:$0xf0]  ;;  %v1573_v20 = vld [vmem:[#allocation5 + $0x84] sm:$0xf]  ;;  %v1619_v21 = vld [vmem:[#allocation5 + $0x1f4] sm:$0xf]  ;;  %v1418_v33 = vor.u32 %v1635_v15, %v1415_v17 }
  0x4a   :  { %840 = vmatpush.bf16.msra.mxu2 %v1202_v39  ;;  %v1351_v22 = vld [vmem:[#allocation5 + $0x1f8] sm:$0xf0]  ;;  %v1167_v30 = vld [vmem:[#allocation5 + $0x88] sm:$0xf0]  ;;  %v1651_v31 = vld [vmem:[#allocation5 + $0x2f4] sm:$0xf]  ;;  %v1422_v34 = vor.u32 %v1638_v19, %v1421_v18 }
  0x4b   :  { %828 = vmatpush.bf16.msrb.mxu3 %v1130_v44  ;;  %v120_v25 = vld.sshfl [vmem:[#allocation1 + $0x30] sm:$0xff pattern:$0x73625140]  ;;  %v118_v26 = vld.sshfl [vmem:[#allocation1 + $0x20] sm:$0xff pattern:$0x73625140]  ;;  %v1354_v38 = vor.u32 %v1619_v21, %v1351_v22  ;;  %v1170_v42 = vor.u32 %v1573_v20, %v1167_v30 }
  0x4c   :  { %802 = vmatpush.bf16.msrb.mxu1 %v1446_v48  ;;  %v1880_v27 = vpack.c.bf16 %v120_v25, %v120_v25  ;;  %v1479_v32 = vld [vmem:[#allocation5 + $0x2f8] sm:$0xf0]  ;;  %v119_v35 = vld.sshfl [vmem:[#allocation1 + $0x28] sm:$0xff pattern:$0x73625140]  ;;  %v1884_v37 = vpack.c.bf16 %v118_v26, %v118_v26 }
  0x4d   :  { %790 = vmatpush.bf16.msrb.mxu0 %v1374_v54  ;;  %v1601_v36 = vld [vmem:[#allocation5 + $0x164] sm:$0xf]  ;;  %v1279_v39 = vld [vmem:[#allocation5 + $0x168] sm:$0xf0]  ;;  %v1482_v45 = vor.u32 %v1651_v31, %v1479_v32  ;;  %v1886_v46 = vpack.c.bf16 %v119_v35, %v119_v35  ;;  %v1599_v51 = vld [vmem:[#allocation5 + $0x154] sm:$0xf] }
  0x4e   :  { %841 = vmatpush.bf16.msra.mxu2 %v1194_v53  ;;  %v1633_v40 = vld [vmem:[#allocation5 + $0x264] sm:$0xf]  ;;  %v1407_v41 = vld [vmem:[#allocation5 + $0x268] sm:$0xf0]  ;;  %v1282_v47 = vor.u32 %v1601_v36, %v1279_v39  ;;  %v1271_v53 = vld [vmem:[#allocation5 + $0x158] sm:$0xf0] }
  0x4f   :  { %829 = vmatpush.bf16.msrb.mxu3 %v1122_v57  ;;  %1491 = vmatmul.msk.bf16.vlgmr.msrb.gmra.mxu2 %vm729_vm0, %v1880_v27  ;;  %v1617_v43 = vld [vmem:[#allocation5 + $0x1e4] sm:$0xf]  ;;  %v1343_v44 = vld [vmem:[#allocation5 + $0x1e8] sm:$0xf0]  ;;  %v1410_v48 = vor.u32 %v1633_v40, %v1407_v41  ;;  %v1631_v54 = vld [vmem:[#allocation5 + $0x254] sm:$0xf]  ;;  %v1274_v59 = vor.u32 %v1599_v51, %v1271_v53 }
  0x50   :  { %803 = vmatpush.bf16.msrb.mxu1 %v1438_v60  ;;  %v1649_v49 = vld [vmem:[#allocation5 + $0x2e4] sm:$0xf]  ;;  %v1471_v50 = vld [vmem:[#allocation5 + $0x2e8] sm:$0xf0]  ;;  %v1346_v52 = vor.u32 %v1617_v43, %v1343_v44  ;;  %v1399_v55 = vld [vmem:[#allocation5 + $0x258] sm:$0xf0] }
  0x51   :  { %791 = vmatpush.bf16.msrb.mxu0 %v1366_v7  ;;  %v1615_v56 = vld [vmem:[#allocation5 + $0x1d4] sm:$0xf]  ;;  %v1335_v57 = vld [vmem:[#allocation5 + $0x1d8] sm:$0xf0]  ;;  %v1474_v58 = vor.u32 %v1649_v49, %v1471_v50  ;;  %v1402_v60 = vor.u32 %v1631_v54, %v1399_v55  ;;  %v1597_v63 = vld [vmem:[#allocation5 + $0x144] sm:$0xf] }
  0x52   :  { %842 = vmatpush.bf16.msra.mxu2 %v1186_v6  ;;  %v1647_v61 = vld [vmem:[#allocation5 + $0x2d4] sm:$0xf]  ;;  %v1463_v62 = vld [vmem:[#allocation5 + $0x2d8] sm:$0xf0]  ;;  %v1338_v1 = vor.u32 %v1615_v56, %v1335_v57  ;;  %v1263_v3 = vld [vmem:[#allocation5 + $0x148] sm:$0xf0] }
  0x53   :  { %830 = vmatpush.bf16.msrb.mxu3 %v1114_v12  ;;  %v1629_v4 = vld [vmem:[#allocation5 + $0x244] sm:$0xf]  ;;  %v1391_v5 = vld [vmem:[#allocation5 + $0x248] sm:$0xf0]  ;;  %v1266_v10 = vor.u32 %v1597_v63, %v1263_v3  ;;  %v1595_v14 = vld [vmem:[#allocation5 + $0x134] sm:$0xf] }
  0x54   :  { %804 = vmatpush.bf16.msrb.mxu1 %v1430_v16  ;;  %v1613_v6 = vld [vmem:[#allocation5 + $0x1c4] sm:$0xf]  ;;  %v1327_v7 = vld [vmem:[#allocation5 + $0x1c8] sm:$0xf0]  ;;  %v1394_v11 = vor.u32 %v1629_v4, %v1391_v5  ;;  %v1255_v16 = vld [vmem:[#allocation5 + $0x138] sm:$0xf0] }
  0x55   :  { %792 = vmatpush.bf16.msrb.mxu0 %v1358_v24  ;;  %v1645_v12 = vld [vmem:[#allocation5 + $0x2c4] sm:$0xf]  ;;  %v1455_v13 = vld [vmem:[#allocation5 + $0x2c8] sm:$0xf0]  ;;  %v1330_v15 = vor.u32 %v1613_v6, %v1327_v7  ;;  %v1627_v17 = vld [vmem:[#allocation5 + $0x234] sm:$0xf]  ;;  %v1258_v22 = vor.u32 %v1595_v14, %v1255_v16 }
  0x56   :  { %843 = vmatpush.bf16.msra.mxu2 %v1178_v23  ;;  %v1383_v18 = vld [vmem:[#allocation5 + $0x238] sm:$0xf0]  ;;  %v1611_v19 = vld [vmem:[#allocation5 + $0x1b4] sm:$0xf]  ;;  %v1458_v21 = vor.u32 %v1645_v12, %v1455_v13  ;;  %v1593_v26 = vld [vmem:[#allocation5 + $0x124] sm:$0xf] }
  0x57   :  { %831 = vmatpush.bf16.msrb.mxu3 %v1106_v28  ;;  %v1319_v20 = vld [vmem:[#allocation5 + $0x1b8] sm:$0xf0]  ;;  %v1386_v23 = vor.u32 %v1627_v17, %v1383_v18  ;;  %v1643_v24 = vld [vmem:[#allocation5 + $0x2b4] sm:$0xf]  ;;  %v1625_v30 = vld [vmem:[#allocation5 + $0x224] sm:$0xf] }
  0x58   :  { %805 = vmatpush.bf16.msrb.mxu1 %v1422_v34  ;;  %793 = vmatmul.bf16.vlgmr.msrb.gmra.mxu0 %v1884_v37  ;;  %v1447_v25 = vld [vmem:[#allocation5 + $0x2b8] sm:$0xf0]  ;;  %v1322_v28 = vor.u32 %v1611_v19, %v1319_v20  ;;  %v1375_v31 = vld [vmem:[#allocation5 + $0x228] sm:$0xf0]  ;;  %v1609_v32 = vld [vmem:[#allocation5 + $0x1a4] sm:$0xf] }
  0x59   :  { %850 = vmatpush.bf16.msra.mxu0 %v1290_v29  ;;  %v1247_v29 = vld [vmem:[#allocation5 + $0x128] sm:$0xf0]  ;;  %v1450_v34 = vor.u32 %v1643_v24, %v1447_v25  ;;  %v1378_v36 = vor.u32 %v1625_v30, %v1375_v31  ;;  %v1591_v40 = vld [vmem:[#allocation5 + $0x114] sm:$0xf]  ;;  %v1431_v51 = vld [vmem:[#allocation5 + $0x298] sm:$0xf0] }
  0x5a   :  { %844 = vmatpush.bf16.msra.mxu2 %v1170_v42  ;;  %832 = vmatmul.bf16.vlgmr.msrb.gmra.mxu3 %v1870_v2  ;;  %v1466_v2 = vor.u32 %v1647_v61, %v1463_v62  ;;  %v1250_v35 = vor.u32 %v1593_v26, %v1247_v29  ;;  %v1439_v39 = vld [vmem:[#allocation5 + $0x2a8] sm:$0xf0]  ;;  %v1239_v42 = vld [vmem:[#allocation5 + $0x118] sm:$0xf0]  ;;  %v1623_v43 = vld [vmem:[#allocation5 + $0x214] sm:$0xf] }
  0x5b   :  { %876 = vmatpush.bf16.msra.mxu3 %v1418_v33  ;;  %806 = vmatmul.bf16.vlgmr.msrb.gmra.mxu1 %v1886_v46  ;;  %v1311_v33 = vld [vmem:[#allocation5 + $0x1a8] sm:$0xf0]  ;;  %v1607_v44 = vld [vmem:[#allocation5 + $0x194] sm:$0xf]  ;;  %v1242_v49 = vor.u32 %v1591_v40, %v1239_v42  ;;  %v1621_v55 = vld [vmem:[#allocation5 + $0x204] sm:$0xf] }
  0x5c   :  { %863 = vmatpush.bf16.msra.mxu1 %v1354_v38  ;;  %v1641_v38 = vld [vmem:[#allocation5 + $0x2a4] sm:$0xf]  ;;  %v1314_v41 = vor.u32 %v1609_v32, %v1311_v33  ;;  %v1231_v53 = vld [vmem:[#allocation5 + $0x108] sm:$0xf0]  ;;  %v1656_v13 = vld [vmem:[#allocation8 + $0x8] sm:$0xff] }
  0x5d   :  { %851 = vmatpush.bf16.msra.mxu0 %v1282_v47  ;;  %v1442_v47 = vor.u32 %v1641_v38, %v1439_v39  ;;  %v1359_v56 = vld [vmem:[#allocation5 + $0x208] sm:$0xf0]  ;;  %v1605_v57 = vld [vmem:[#allocation5 + $0x184] sm:$0xf]  ;;  %v1668_v26 = vld [vmem:[#allocation8 + $0x68] sm:$0xff] }
  0x5e   :  { %889 = vmatpush.bf16.msrb.mxu2 %v1482_v45  ;;  %v1303_v45 = vld [vmem:[#allocation5 + $0x198] sm:$0xf0]  ;;  %v1362_v63 = vor.u32 %v1621_v55, %v1359_v56  ;;  %v1637_v3 = vld [vmem:[#allocation5 + $0x284] sm:$0xf]  ;;  %v1423_v4 = vld [vmem:[#allocation5 + $0x288] sm:$0xf0] }
  0x5f   :  { %877 = vmatpush.bf16.msra.mxu3 %v1410_v48  ;;  %845 = vmatmul.bf16.vlgmr.msra.gmra.mxu2 %v1874_v9  ;;  %v1367_v9 = vld [vmem:[#allocation5 + $0x218] sm:$0xf0]  ;;  %v1639_v48 = vld [vmem:[#allocation5 + $0x294] sm:$0xf]  ;;  %v1306_v54 = vor.u32 %v1607_v44, %v1303_v45  ;;  %v1426_v6 = vor.u32 %v1637_v3, %v1423_v4  ;;  %v1662_v7 = vld [vmem:[#allocation8 + $0x38] sm:$0xff] }
  0x60   :  { %864 = vmatpush.bf16.msra.mxu1 %v1346_v52  ;;  %v1370_v50 = vor.u32 %v1623_v43, %v1367_v9  ;;  %v1589_v52 = vld [vmem:[#allocation5 + $0x104] sm:$0xf]  ;;  %v1434_v61 = vor.u32 %v1639_v48, %v1431_v51  ;;  %v1658_v12 = vld [vmem:[#allocation8 + $0x18] sm:$0xff]  ;;  %v1667_v31 = vld [vmem:[#allocation8 + $0x60] sm:$0xff] }
  0x61   :  { %852 = vmatpush.bf16.msra.mxu0 %v1274_v59  ;;  %v1653_v59 = vld [vmem:[#allocation5 + $0x304] sm:$0xf]  ;;  %v1234_v62 = vor.u32 %v1589_v52, %v1231_v53  ;;  %v1664_v44 = vld [vmem:[#allocation8 + $0x48] sm:$0xff] }
  0x62   :  { %890 = vmatpush.bf16.msrb.mxu2 %v1474_v58  ;;  %v1295_v58 = vld [vmem:[#allocation5 + $0x188] sm:$0xf0]  ;;  %v1665_v42 = vld [vmem:[#allocation8 + $0x50] sm:$0xff] }
  0x63   :  { %878 = vmatpush.bf16.msra.mxu3 %v1402_v60  ;;  %v1487_v60 = vld [vmem:[#allocation5 + $0x308] sm:$0xf0] }
  0x64   :  { %865 = vmatpush.bf16.msra.mxu1 %v1338_v1  ;;  %v1298_v1 = vor.u32 %v1605_v57, %v1295_v58  ;;  %v1490_v5 = vor.u32 %v1653_v59, %v1487_v60 }
  0x65   :  { %853 = vmatpush.bf16.msra.mxu0 %v1266_v10  ;;  %v1660_v10 = vld [vmem:[#allocation8 + $0x28] sm:$0xff] }
  0x66   :  { %891 = vmatpush.bf16.msrb.mxu2 %v1466_v2  ;;  %v1661_v2 = vld [vmem:[#allocation8 + $0x30] sm:$0xff] }
  0x67   :  { %879 = vmatpush.bf16.msra.mxu3 %v1394_v11  ;;  %v1659_v11 = vld [vmem:[#allocation8 + $0x20] sm:$0xff] }
  0x68   :  { %866 = vmatpush.bf16.msra.mxu1 %v1330_v15 }
  0x69   :  { %854 = vmatpush.bf16.msra.mxu0 %v1258_v22 }
  0x6a   :  { %892 = vmatpush.bf16.msrb.mxu2 %v1458_v21  ;;  %v1670_v21 = vld [vmem:[#allocation8 + $0x78] sm:$0xff] }
  0x6b   :  { %880 = vmatpush.bf16.msra.mxu3 %v1386_v23  ;;  %v1669_v23 = vld [vmem:[#allocation8 + $0x70] sm:$0xff] }
  0x6c   :  { %867 = vmatpush.bf16.msra.mxu1 %v1322_v28 }
  0x6d   :  { %855 = vmatpush.bf16.msra.mxu0 %v1250_v35 }
  0x6e   :  { %893 = vmatpush.bf16.msrb.mxu2 %v1450_v34 }
  0x6f   :  { %881 = vmatpush.bf16.msra.mxu3 %v1378_v36  ;;  %v1666_v36 = vld [vmem:[#allocation8 + $0x58] sm:$0xff] }
  0x70   :  { %868 = vmatpush.bf16.msra.mxu1 %v1314_v41 }
  0x71   :  { %856 = vmatpush.bf16.msra.mxu0 %v1242_v49 }
  0x72   :  { %894 = vmatpush.bf16.msrb.mxu2 %v1442_v47  ;;  %v1663_v47 = vld [vmem:[#allocation8 + $0x40] sm:$0xff] }
  0x73   :  { %882 = vmatpush.bf16.msra.mxu3 %v1370_v50 }
  0x74   :  { %869 = vmatpush.bf16.msra.mxu1 %v1306_v54 }
  0x75   :  { %857 = vmatpush.bf16.msra.mxu0 %v1234_v62 }
  0x76   :  { %895 = vmatpush.bf16.msrb.mxu2 %v1434_v61 }
  0x77   :  { %883 = vmatpush.bf16.msra.mxu3 %v1362_v63 }
  0x78   :  { %870 = vmatpush.bf16.msra.mxu1 %v1298_v1  ;;  %858 = vmatmul.bf16.vlgmr.msra.gmra.mxu0 %v1868_v0  ;;  %v1657_v0 = vld [vmem:[#allocation8 + $0x10] sm:$0xff] }
  0x79   :  { %909 = vmatpush.bf16.msrb.mxu0 %v1490_v5 }
  0x7a   :  { %884 = vmatmul.bf16.vlgmr.msra.gmra.mxu3 %v1884_v37  ;;  %896 = vmatpush.bf16.msrb.mxu2 %v1426_v6 }
  0x7b   :  { %871 = vmatmul.bf16.vlgmr.msra.gmra.mxu1 %v1872_v8  ;;  %1064 = vmatpush.bf16.msrb.mxu3 %v1670_v21 }
  0x7c   :  { %1051 = vmatpush.bf16.msrb.mxu1 %v1662_v7 }
  0x7d   :  { %897 = vmatmul.bf16.vlgmr.msrb.gmra.mxu2 %v1886_v46  ;;  %v1655_v46 = vld [vmem:[#allocation8] sm:$0xff] }
  0x7f   :  { %1065 = vmatpush.bf16.msrb.mxu3 %v1669_v23 }
  0x80   :  { %1052 = vmatpush.bf16.msrb.mxu1 %v1661_v2 }
  0x83   :  { %1066 = vmatpush.bf16.msrb.mxu3 %v1668_v26 }
  0x84   :  { %1053 = vmatpush.bf16.msrb.mxu1 %v1660_v10 }
  0x87   :  { %1067 = vmatpush.bf16.msrb.mxu3 %v1667_v31 }
  0x88   :  { %1492 = vmatmul.msk.bf16.vlgmr.msrb.gmra.mxu0 %vm729_vm0, %v1880_v27  ;;  %1054 = vmatpush.bf16.msrb.mxu1 %v1659_v11  ;;  %v233_v27 = vld [vmem:[#allocation7] sm:$0x3]  ;;  %v1684_v11 = vld [vmem:[%s1908_s4] ss:$0 sm:$0xff] }
  0x89   :  { %v235_v18 = vperm.slane %v233_v27, 0  ;;  %v236_v49 = vperm.slane %v233_v27, 1 }
  0x8b   :  { %1068 = vmatpush.bf16.msrb.mxu3 %v1666_v36 }
  0x8c   :  { %1055 = vmatpush.bf16.msrb.mxu1 %v1658_v12 }
  0x8f   :  { %1069 = vmatpush.bf16.msrb.mxu3 %v1665_v42 }
  0x90   :  { %1056 = vmatpush.bf16.msrb.mxu1 %v1657_v0 }
  0x93   :  { %1070 = vmatpush.bf16.msrb.mxu3 %v1664_v44 }
  0x94   :  { %1057 = vmatpush.bf16.msrb.mxu1 %v1656_v13 }
  0x97   :  { %1071 = vmatpush.bf16.msrb.mxu3 %v1663_v47 }
  0x98   :  { %1058 = vmatpush.bf16.msrb.mxu1 %v1655_v46 }
  0xb5   :  { %v742_v37 = vpop.f32.mrf.mxu0 }
  0xb6   :  { %v743_v20 = vadd.f32 %v742_v37, %v235_v18 }
  0xb8   :  { %v755_v8 = vpop.f32.mrf.mxu1 }
  0xb9   :  { %v756_v24 = vadd.f32 %v755_v8, %v743_v20 }
  0xbc   :  { %v768_v14 = vpop.f32.mrf.mxu2 }
  0xbd   :  { %v744_v15 = vpop.f32.mrf.mxu0  ;;  %v781_v16 = vpop.f32.mrf.mxu3  ;;  %v769_v25 = vadd.f32 %v768_v14, %v756_v24 }
  0xbf   :  { %v782_v28 = vadd.f32 %v781_v16, %v769_v25 }
  0xc0   :  { %v757_v17 = vpop.f32.mrf.mxu1 }
  0xc4   :  { %v770_v19 = vpop.f32.mrf.mxu2 }
  0xc5   :  { %v783_v22 = vpop.f32.mrf.mxu3 }
  0xd2   :  { %v820_v33 = vpop.f32.mrf.mxu2 }
  0xd5   :  { %v794_v29 = vpop.f32.mrf.mxu0 }
  0xd6   :  { %v795_v30 = vadd.f32 %v794_v29, %v782_v28 }
  0xd8   :  { %v807_v32 = vpop.f32.mrf.mxu1 }
  0xd9   :  { %v808_v34 = vadd.f32 %v807_v32, %v795_v30 }
  0xda   :  { %v822_v43 = vpop.f32.mrf.mxu2 }
  0xdb   :  { %v821_v35 = vadd.f32 %v820_v33, %v808_v34 }
  0xdd   :  { %v915_v38 = vmax.f32 %v821_v35, 0.0  ;;  %v833_v39 = vpop.f32.mrf.mxu3  ;;  %v796_v40 = vpop.f32.mrf.mxu0 }
  0xde   :  { %v834_v51 = vadd.f32 %v833_v39, %v236_v49 }
  0xdf   :  { %v917_v41 = vpack.c.bf16 %v915_v38, %v915_v38 }
  0xe0   :  { %v809_v9 = vpop.f32.mrf.mxu1 }
  0xe1   :  { %1059 = vmatmul.bf16.vlgmr.msrb.gmra.mxu1 %v917_v41 }
  0xe2   :  { %v846_v48 = vpop.f32.mrf.mxu2 }
  0xe3   :  { %v847_v53 = vadd.f32 %v846_v48, %v834_v51 }
  0xe5   :  { %v835_v45 = vpop.f32.mrf.mxu3 }
  0xea   :  { %v848_v50 = vpop.f32.mrf.mxu2 }
  0xf5   :  { %v859_v52 = vpop.f32.mrf.mxu0 }
  0xf6   :  { %v860_v55 = vadd.f32 %v859_v52, %v847_v53 }
  0xf8   :  { %v872_v54 = vpop.f32.mrf.mxu1 }
  0xf9   :  { %v873_v58 = vadd.f32 %v872_v54, %v860_v55 }
  0xfd   :  { %v885_v56 = vpop.f32.mrf.mxu3  ;;  %v861_v57 = vpop.f32.mrf.mxu0 }
  0xfe   :  { %v886_v61 = vadd.f32 %v885_v56, %v873_v58 }
 0x100   :  { %v874_v59 = vpop.f32.mrf.mxu1  ;;  %v898_v60 = vpop.f32.mrf.mxu2 }
 0x101   :  { %v899_v63 = vadd.f32 %v898_v60, %v886_v61 }
 0x105   :  { %v887_v62 = vpop.f32.mrf.mxu3  ;;  %v911_v1 = vpop.f32.mrf.mxu0 }
 0x106   :  { %v912_v3 = vadd.f32 %v911_v1, %v899_v63 }
 0x108   :  { %v900_v4 = vpop.f32.mrf.mxu2  ;;  %v916_v5 = vmax.f32 %v912_v3, 0.0 }
 0x10a   :  { %v918_v6 = vpack.c.bf16 %v916_v5, %v916_v5 }
 0x10c   :  { %1072 = vmatmul.bf16.vlgmr.msrb.gmra.mxu3 %v918_v6 }
 0x10d   :  { %v913_v7 = vpop.f32.mrf.mxu0 }
 0x15e   :  { %v1060_v2 = vpop.f32.mrf.mxu1 }
 0x15f   :  { %v1061_v12 = vadd.f32 %v1684_v11, %v1060_v2 }
 0x166   :  { %v1062_v10 = vpop.f32.mrf.mxu1 }
 0x18f   :  { %v1073_v0 = vpop.f32.mrf.mxu3 }
 0x190   :  { %v1074_v37 = vadd.f32 %v1073_v0, %v1061_v12 }
 0x192   :  { %1077 = vst [vmem:[#allocation10] sm:$0xff] %v1074_v37 }
 0x197   :  { %v1075_v13 = vpop.f32.mrf.mxu3 }
 0x198   :  { %1081 = vsyncadd [#allocation4], 96  ;;  %s1084_s19 = sshll.u32 %s1909_s5, 4  ;;  %s1823_s20 = smov [#allocation10]   ;;  %s1085_s19 = int_to_ptr.hbm [resolvable:$true] %s1084_s19 }
 0x199   :  { %s1082_s21 = sshll.u32 %s1823_s20, 4  ;;  %s1824_s22 = smov 32   ;;  %s1083_s21 = int_to_ptr.vmem [resolvable:$true] %s1082_s21 }
 0x19a   :  { %s1825_s23 = smov 2  }
 0x19b   :  { %1090 = dma.vmem_to_hbm [thread:$0]  %s1083_s21, 32, %s1085_s19, [#allocation4], %s1824_s22, %s1824_s22, %s1825_s23  }
 0x19c   :  { %1811 = dma.done.wait [#allocation4], 128  }
 0x19d   :  { %1812 = vsyncadd [#allocation4], 4294967168 }
 0x19e   :  { %1095 = vsyncpa [#allocation3], 1 }
 0x19f   :  { %1096 = vsyncpa [#allocation6], 1 }
 0x1a0   :  { %1097 = vsyncpa [#allocation9], 1 }
 0x1a1   :  { %1098 = vsyncpa [#allocation4], 1 }

</bundles_post_ra>
